<compile_context>
chip_gen: v7x
topology: tpu7x:2x2x1
jax: 0.10.0
libtpu: 0.0.40
codegen_flags: <defaults>
</compile_context>

<pallas_src>
import functools
from typing import NamedTuple

import jax
import jax.numpy as jnp
from jax.experimental import pallas as pl
from jax.experimental.pallas import tpu as pltpu

LANES = 128
SUBLANES = 16  # bf16 sublane packing granule (over-aligned, also fine for f32)


def _round_up(n: int, m: int) -> int:
    return ((n + m - 1) // m) * m


# --------------------------------------------------------------------------
# Kernel
# --------------------------------------------------------------------------
def actor_critic_kernel(x_ref, w1_ref, b1_ref, wh_ref, bh_ref, out_ref, *,
                        action_n: int):
    """Two-layer MLP, fused actor-softmax + critic-value heads.

    x_ref  : (TILE_B, S)       compute dtype (bf16 or f32)
    w1_ref : (S, H_pad)        compute dtype
    b1_ref : (1, H_pad)        f32
    wh_ref : (H_pad, NH_pad)   compute dtype, cols [0:A]=actor, col A=critic, rest 0
    bh_ref : (1, NH_pad)       f32
    out_ref: (TILE_B, NH_pad)  lane-dense fused output (bf16)
    """
    x = x_ref[...]

    # fl1 + ReLU (MXU dot, f32 accumulate; bias/ReLU in f32).
    h = jnp.dot(x, w1_ref[...], preferred_element_type=jnp.float32)
    h = jnp.maximum(h + b1_ref[...], 0.0)                        # (TB, H_pad) f32

    # Fused actor+critic head: one lane-dense matmul instead of two skinny ones.
    fused = jnp.dot(h.astype(wh_ref.dtype), wh_ref[...],
                    preferred_element_type=jnp.float32) + bh_ref[...]  # (TB, NH_pad)

    lane = jax.lax.broadcasted_iota(jnp.int32, fused.shape, 1)
    actor_mask = lane < action_n          # first A lanes  -> softmax logits
    value_mask = lane == action_n         # lane A         -> critic value

    # Masked, max-stabilized softmax over the first `action_n` lanes only.
    logits = jnp.where(actor_mask, fused, -jnp.inf)
    m = jnp.max(logits, axis=-1, keepdims=True)
    e = jnp.exp(logits - m)                                      # padded lanes -> 0
    inv = pl.reciprocal(jnp.sum(e, axis=-1, keepdims=True), approx=True)
    probs = e * inv

    # Single lane-dense store: [probs | value | zeros].
    out_ref[...] = jnp.where(
        actor_mask, probs,
        jnp.where(value_mask, fused, 0.0)).astype(out_ref.dtype)


# --------------------------------------------------------------------------
# One-time parameter preparation (hoisted out of the per-call forward path)
# --------------------------------------------------------------------------
class PreparedParams(NamedTuple):
    w1: jax.Array      # (state_n, h_pad)    compute dtype
    b1: jax.Array      # (1, h_pad)          f32
    wh: jax.Array      # (h_pad, nh_pad)     compute dtype (actor | critic | zeros)
    bh: jax.Array      # (1, nh_pad)         f32
    action_n: int
    state_n: int


def prepare_params(params, *, compute_dtype=jnp.bfloat16) -> PreparedParams:
    """Zero-pad, fuse and cast the nn.Linear parameters ONCE.

    Call this once per parameter update and reuse the result across forward
    calls; doing it per-call previously cost more launches/HBM traffic than
    the kernel itself at RL-sized batches.
    Zero padding keeps the math identical: padded hidden units are ReLU(0)=0
    and hit zero rows of the fused head weight.
    """
    state_n, hidden_n = params["w1"].shape
    action_n = params["wa"].shape[1]
    h_pad = _round_up(hidden_n, LANES)
    nh_pad = _round_up(action_n + 1, LANES)   # actor lanes + 1 critic lane, lane-dense

    f32 = jnp.float32
    w1 = jnp.zeros((state_n, h_pad), f32).at[:, :hidden_n].set(params["w1"])
    b1 = jnp.zeros((1, h_pad), f32).at[:, :hidden_n].set(params["b1"])
    wh = jnp.zeros((h_pad, nh_pad), f32)
    wh = wh.at[:hidden_n, :action_n].set(params["wa"])
    wh = wh.at[:hidden_n, action_n:action_n + 1].set(params["wv"])
    bh = jnp.zeros((1, nh_pad), f32)
    bh = bh.at[:, :action_n].set(params["ba"])
    bh = bh.at[:, action_n:action_n + 1].set(params["bv"])

    return PreparedParams(
        w1=w1.astype(compute_dtype), b1=b1,
        wh=wh.astype(compute_dtype), bh=bh,
        action_n=int(action_n), state_n=int(state_n))


# --------------------------------------------------------------------------
# Forward wrapper
# --------------------------------------------------------------------------
def _pick_tiling(batch: int, tile_b: int):
    """Sublane-aligned batch tile; keep grid >= 2 when possible (v7x megacore)."""
    tile_cap = _round_up(batch, SUBLANES)
    tile_b = max(SUBLANES, _round_up(min(tile_b, tile_cap), SUBLANES))
    grid_n = pl.cdiv(tile_cap, tile_b)
    if grid_n == 1 and tile_cap >= 2 * SUBLANES:
        grid_n = 2   # use both TensorCores on v7x; harmless on v5e/v6e
    tile_b = _round_up(pl.cdiv(tile_cap, grid_n), SUBLANES)
    return tile_b, grid_n, tile_b * grid_n


def actor_critic_forward(x, prepared: PreparedParams, *, tile_b: int = 2048,
                         out_dtype=jnp.bfloat16):
    """Full ActorCriticModel forward pass in one Pallas kernel.

    Args:
      x: (batch, state_n) float32 states.
      prepared: output of prepare_params() (padded/fused/cast weights).
    Returns:
      (action_prob (batch, action_n) f32, state_values (batch, 1) f32)
    """
    batch, state_n = x.shape
    assert state_n == prepared.state_n, "state_n mismatch with prepared params"
    action_n = prepared.action_n
    h_pad = prepared.w1.shape[1]
    nh_pad = prepared.wh.shape[1]
    compute_dtype = prepared.w1.dtype

    tile_b, grid_n, b_pad = _pick_tiling(batch, tile_b)

    # Skip the pad copy entirely when the batch already tiles evenly.
    if b_pad == batch:
        x_p = x.astype(compute_dtype)
    else:
        x_p = jnp.pad(x.astype(compute_dtype), ((0, b_pad - batch), (0, 0)))

    itemsize = jnp.dtype(compute_dtype).itemsize
    cost = pl.CostEstimate(
        flops=2 * b_pad * (state_n * h_pad + h_pad * nh_pad),
        transcendentals=b_pad * nh_pad,
        bytes_accessed=(x_p.size * itemsize
                        + (prepared.w1.size + prepared.wh.size) * itemsize
                        + (prepared.b1.size + prepared.bh.size) * 4
                        + b_pad * nh_pad * jnp.dtype(out_dtype).itemsize),
    )

    def _call(resident_mode):
        def const_spec(shape):
            # Grid-constant operands: stay VMEM-resident; with Buffered(1) we
            # also avoid allocating a useless second buffer / prefetch wave.
            if resident_mode is None:
                return pl.BlockSpec(shape, lambda i: (0, 0))
            return pl.BlockSpec(shape, lambda i: (0, 0),
                                pipeline_mode=resident_mode)

        return pl.pallas_call(
            functools.partial(actor_critic_kernel, action_n=action_n),
            out_shape=jax.ShapeDtypeStruct((b_pad, nh_pad), out_dtype),
            grid=(grid_n,),
            in_specs=[
                pl.BlockSpec((tile_b, state_n), lambda i: (i, 0)),  # x: batch-tiled
                const_spec((state_n, h_pad)),
                const_spec((1, h_pad)),
                const_spec((h_pad, nh_pad)),
                const_spec((1, nh_pad)),
            ],
            out_specs=pl.BlockSpec((tile_b, nh_pad), lambda i: (i, 0)),
            compiler_params=pltpu.CompilerParams(
                dimension_semantics=("parallel",)),
            cost_estimate=cost,
        )(x_p, prepared.w1, prepared.b1, prepared.wh, prepared.bh)

    try:
        fused_out = _call(pl.Buffered(1))
    except Exception:
        # Fallback for jax versions without Buffered() support on TPU
        # pallas_call inputs; semantics identical, tiny extra VMEM buffer.
        fused_out = _call(None)

    action_prob = fused_out[:batch, :action_n].astype(jnp.float32)
    state_values = fused_out[:batch, action_n:action_n + 1].astype(jnp.float32)
    return action_prob, state_values


def init_params(key, state_n, action_n, hidden_n):
    """Deterministic synthetic parameters matching nn.Linear shapes (x @ W + b)."""
    ks = jax.random.split(key, 6)
    scale = 0.1
    return {
        "w1": scale * jax.random.normal(ks[0], (state_n, hidden_n), jnp.float32),
        "b1": scale * jax.random.normal(ks[1], (1, hidden_n), jnp.float32),
        "wa": scale * jax.random.normal(ks[2], (hidden_n, action_n), jnp.float32),
        "ba": scale * jax.random.normal(ks[3], (1, action_n), jnp.float32),
        "wv": scale * jax.random.normal(ks[4], (hidden_n, 1), jnp.float32),
        "bv": scale * jax.random.normal(ks[5], (1, 1), jnp.float32),
    }


if __name__ == "__main__":
    # LunarLander-like sizes: state_n=8, action_n=4; small batch + hidden.
    # (At this size the kernel is pure launch overhead; the grid/tiling scales
    #  to thousands of rows unchanged.)
    batch, state_n, action_n, hidden_n = 2, 8, 4, 32

    key = jax.random.PRNGKey(0)
    k_x, k_p = jax.random.split(key)
    x = jax.random.normal(k_x, (batch, state_n), jnp.float32)
    params = init_params(k_p, state_n, action_n, hidden_n)

    prepared = prepare_params(params)          # one-time prep, reused per call
    action_prob, state_values = actor_critic_forward(x, prepared)
    jax.block_until_ready((action_prob, state_values))

    # Pure-JAX f32 reference (kernel uses bf16 MXU inputs + bf16 output slab,
    # so tolerances are bf16-appropriate).
    h_ref = jnp.maximum(x @ params["w1"] + params["b1"], 0.0)
    ap_ref = jax.nn.softmax(h_ref @ params["wa"] + params["ba"], axis=-1)
    sv_ref = h_ref @ params["wv"] + params["bv"]

    assert action_prob.shape == (batch, action_n)
    assert state_values.shape == (batch, 1)
    assert jnp.allclose(jnp.sum(action_prob, axis=-1), 1.0, atol=2e-2)
    assert jnp.allclose(action_prob, ap_ref, atol=2e-2)
    assert jnp.allclose(state_values, sv_ref, atol=2e-2)

    print("KERNEL_OK")
</pallas_src>

<mosaic_0001>
module attributes {stable_mosaic.version = 11 : i64} {
  func.func @actor_critic_kernel(%arg0: i32, %arg1: memref<16x8xbf16, #tpu.memory_space<vmem>>, %arg2: memref<8x128xbf16, #tpu.memory_space<vmem>>, %arg3: memref<1x128xf32, #tpu.memory_space<vmem>>, %arg4: memref<128x128xbf16, #tpu.memory_space<vmem>>, %arg5: memref<1x128xf32, #tpu.memory_space<vmem>>, %arg6: memref<16x128xbf16, #tpu.memory_space<vmem>>) attributes {dimension_semantics = [#tpu.dimension_semantics<parallel>], iteration_bounds = array<i64: 1>, scalar_prefetch = 0 : i64, scratch_operands = 0 : i64, tpu.core_type = #tpu.core_type<tc>, window_params = [{transform_indices = @transform_0, window_bounds = array<i64: 16, 8>}, {pipeline_mode = #tpu.pipeline_mode<synchronous>, transform_indices = @transform_1, window_bounds = array<i64: 8, 128>}, {pipeline_mode = #tpu.pipeline_mode<synchronous>, transform_indices = @transform_2, window_bounds = array<i64: 1, 128>}, {pipeline_mode = #tpu.pipeline_mode<synchronous>, transform_indices = @transform_3, window_bounds = array<i64: 128, 128>}, {pipeline_mode = #tpu.pipeline_mode<synchronous>, transform_indices = @transform_4, window_bounds = array<i64: 1, 128>}, {transform_indices = @transform_5, window_bounds = array<i64: 16, 128>}]} {
    %c0 = arith.constant 0 : index
    %c0_0 = arith.constant 0 : index
    %0 = vector.load %arg1[%c0, %c0_0] : memref<16x8xbf16, #tpu.memory_space<vmem>>, vector<16x8xbf16>
    %c0_1 = arith.constant 0 : index
    %c0_2 = arith.constant 0 : index
    %1 = vector.load %arg2[%c0_1, %c0_2] : memref<8x128xbf16, #tpu.memory_space<vmem>>, vector<8x128xbf16>
    %cst = arith.constant dense<0.000000e+00> : vector<16x128xf32>
    %2 = tpu.matmul %0, %1, %cst {dimension_numbers = #tpu.dot_dimension_numbers<[1], [0], [0], [1], [0, 0, 1, 1], [], []>} : vector<16x8xbf16>, vector<8x128xbf16>, vector<16x128xf32> -> vector<16x128xf32>
    %c0_3 = arith.constant 0 : index
    %c0_4 = arith.constant 0 : index
    %3 = vector.load %arg3[%c0_3, %c0_4] : memref<1x128xf32, #tpu.memory_space<vmem>>, vector<1x128xf32>
    %4 = vector.broadcast %3 : vector<1x128xf32> to vector<16x128xf32>
    %5 = arith.addf %2, %4 : vector<16x128xf32>
    %cst_5 = arith.constant 0.000000e+00 : f32
    %6 = vector.broadcast %cst_5 : f32 to vector<16x128xf32>
    %7 = arith.maximumf %5, %6 : vector<16x128xf32>
    %8 = arith.truncf %7 : vector<16x128xf32> to vector<16x128xbf16>
    %c0_6 = arith.constant 0 : index
    %c0_7 = arith.constant 0 : index
    %9 = vector.load %arg4[%c0_6, %c0_7] : memref<128x128xbf16, #tpu.memory_space<vmem>>, vector<128x128xbf16>
    %cst_8 = arith.constant dense<0.000000e+00> : vector<16x128xf32>
    %10 = tpu.matmul %8, %9, %cst_8 {dimension_numbers = #tpu.dot_dimension_numbers<[1], [0], [0], [1], [0, 0, 1, 1], [], []>} : vector<16x128xbf16>, vector<128x128xbf16>, vector<16x128xf32> -> vector<16x128xf32>
    %c0_9 = arith.constant 0 : index
    %c0_10 = arith.constant 0 : index
    %11 = vector.load %arg5[%c0_9, %c0_10] : memref<1x128xf32, #tpu.memory_space<vmem>>, vector<1x128xf32>
    %12 = vector.broadcast %11 : vector<1x128xf32> to vector<16x128xf32>
    %13 = arith.addf %10, %12 : vector<16x128xf32>
    %14 = tpu.iota {dimensions = array<i32: 1>} : vector<16x128xi32>
    %c4_i32 = arith.constant 4 : i32
    %15 = vector.broadcast %c4_i32 : i32 to vector<16x128xi32>
    %16 = arith.cmpi slt, %14, %15 : vector<16x128xi32>
    %c4_i32_11 = arith.constant 4 : i32
    %17 = vector.broadcast %c4_i32_11 : i32 to vector<16x128xi32>
    %18 = arith.cmpi eq, %14, %17 : vector<16x128xi32>
    %cst_12 = arith.constant 0xFF800000 : f32
    %19 = vector.broadcast %cst_12 : f32 to vector<16x128xf32>
    %20 = arith.select %16, %13, %19 : vector<16x128xi1>, vector<16x128xf32>
    %cst_13 = arith.constant dense<0xFF800000> : vector<16xf32>
    %21 = vector.multi_reduction <maximumf>, %20, %cst_13 [1] : vector<16x128xf32> to vector<16xf32>
    %22 = vector.shape_cast %21 : vector<16xf32> to vector<16x1xf32>
    %23 = vector.broadcast %22 : vector<16x1xf32> to vector<16x128xf32>
    %24 = arith.subf %20, %23 : vector<16x128xf32>
    %25 = math.exp %24 : vector<16x128xf32>
    %cst_14 = arith.constant dense<0.000000e+00> : vector<16xf32>
    %26 = vector.multi_reduction <add>, %25, %cst_14 [1] : vector<16x128xf32> to vector<16xf32>
    %27 = vector.shape_cast %26 : vector<16xf32> to vector<16x1xf32>
    %28 = tpu.reciprocal %27 {approx = true} : vector<16x1xf32> -> vector<16x1xf32>
    %29 = vector.broadcast %28 : vector<16x1xf32> to vector<16x128xf32>
    %30 = arith.mulf %25, %29 : vector<16x128xf32>
    %cst_15 = arith.constant 0.000000e+00 : f32
    %31 = vector.broadcast %cst_15 : f32 to vector<16x128xf32>
    %32 = arith.select %18, %13, %31 : vector<16x128xi1>, vector<16x128xf32>
    %33 = arith.select %16, %30, %32 : vector<16x128xi1>, vector<16x128xf32>
    %34 = arith.truncf %33 : vector<16x128xf32> to vector<16x128xbf16>
    %c0_16 = arith.constant 0 : index
    %c0_17 = arith.constant 0 : index
    %35 = vector.load %arg6[%c0_16, %c0_17] : memref<16x128xbf16, #tpu.memory_space<vmem>>, vector<16x128xbf16>
    tpu.vector_store %arg6[%c0_16, %c0_17], %34 {strides = array<i32>} : memref<16x128xbf16, #tpu.memory_space<vmem>>, vector<16x128xbf16>,
    return
  }
  func.func @transform_0(%arg0: i32) -> (i32, i32) {
    %c0_i32 = arith.constant 0 : i32
    %c0_i32_0 = arith.constant 0 : i32
    return %arg0, %c0_i32 : i32, i32
  }
  func.func @transform_1(%arg0: i32) -> (i32, i32) {
    %c0_i32 = arith.constant 0 : i32
    %c0_i32_0 = arith.constant 0 : i32
    %c0_i32_1 = arith.constant 0 : i32
    return %c0_i32, %c0_i32_0 : i32, i32
  }
  func.func @transform_2(%arg0: i32) -> (i32, i32) {
    %c0_i32 = arith.constant 0 : i32
    %c0_i32_0 = arith.constant 0 : i32
    %c0_i32_1 = arith.constant 0 : i32
    return %c0_i32, %c0_i32_0 : i32, i32
  }
  func.func @transform_3(%arg0: i32) -> (i32, i32) {
    %c0_i32 = arith.constant 0 : i32
    %c0_i32_0 = arith.constant 0 : i32
    %c0_i32_1 = arith.constant 0 : i32
    return %c0_i32, %c0_i32_0 : i32, i32
  }
  func.func @transform_4(%arg0: i32) -> (i32, i32) {
    %c0_i32 = arith.constant 0 : i32
    %c0_i32_0 = arith.constant 0 : i32
    %c0_i32_1 = arith.constant 0 : i32
    return %c0_i32, %c0_i32_0 : i32, i32
  }
  func.func @transform_5(%arg0: i32) -> (i32, i32) {
    %c0_i32 = arith.constant 0 : i32
    %c0_i32_0 = arith.constant 0 : i32
    return %arg0, %c0_i32 : i32, i32
  }
}

module attributes {stable_mosaic.version = 11 : i64} {
  func.func @actor_critic_kernel(%arg0: i32, %arg1: memref<16x8xbf16, #tpu.memory_space<vmem>>, %arg2: memref<8x128xbf16, #tpu.memory_space<vmem>>, %arg3: memref<1x128xf32, #tpu.memory_space<vmem>>, %arg4: memref<128x128xbf16, #tpu.memory_space<vmem>>, %arg5: memref<1x128xf32, #tpu.memory_space<vmem>>, %arg6: memref<16x128xbf16, #tpu.memory_space<vmem>>) attributes {dimension_semantics = [#tpu.dimension_semantics<parallel>], iteration_bounds = array<i64: 1>, scalar_prefetch = 0 : i64, scratch_operands = 0 : i64, tpu.core_type = #tpu.core_type<tc>, window_params = [{transform_indices = @transform_0, window_bounds = array<i64: 16, 8>}, {pipeline_mode = #tpu.pipeline_mode<synchronous>, transform_indices = @transform_1, window_bounds = array<i64: 8, 128>}, {pipeline_mode = #tpu.pipeline_mode<synchronous>, transform_indices = @transform_2, window_bounds = array<i64: 1, 128>}, {pipeline_mode = #tpu.pipeline_mode<synchronous>, transform_indices = @transform_3, window_bounds = array<i64: 128, 128>}, {pipeline_mode = #tpu.pipeline_mode<synchronous>, transform_indices = @transform_4, window_bounds = array<i64: 1, 128>}, {transform_indices = @transform_5, window_bounds = array<i64: 16, 128>}]} {
    %c0 = arith.constant 0 : index
    %c0_0 = arith.constant 0 : index
    %0 = vector.load %arg1[%c0, %c0_0] : memref<16x8xbf16, #tpu.memory_space<vmem>>, vector<16x8xbf16>
    %c0_1 = arith.constant 0 : index
    %c0_2 = arith.constant 0 : index
    %1 = vector.load %arg2[%c0_1, %c0_2] : memref<8x128xbf16, #tpu.memory_space<vmem>>, vector<8x128xbf16>
    %cst = arith.constant dense<0.000000e+00> : vector<16x128xf32>
    %2 = tpu.matmul %0, %1, %cst {dimension_numbers = #tpu.dot_dimension_numbers<[1], [0], [0], [1], [0, 0, 1, 1], [], []>} : vector<16x8xbf16>, vector<8x128xbf16>, vector<16x128xf32> -> vector<16x128xf32>
    %c0_3 = arith.constant 0 : index
    %c0_4 = arith.constant 0 : index
    %3 = vector.load %arg3[%c0_3, %c0_4] : memref<1x128xf32, #tpu.memory_space<vmem>>, vector<1x128xf32>
    %4 = vector.broadcast %3 : vector<1x128xf32> to vector<16x128xf32>
    %5 = arith.addf %2, %4 : vector<16x128xf32>
    %cst_5 = arith.constant 0.000000e+00 : f32
    %6 = vector.broadcast %cst_5 : f32 to vector<16x128xf32>
    %7 = arith.maximumf %5, %6 : vector<16x128xf32>
    %8 = arith.truncf %7 : vector<16x128xf32> to vector<16x128xbf16>
    %c0_6 = arith.constant 0 : index
    %c0_7 = arith.constant 0 : index
    %9 = vector.load %arg4[%c0_6, %c0_7] : memref<128x128xbf16, #tpu.memory_space<vmem>>, vector<128x128xbf16>
    %cst_8 = arith.constant dense<0.000000e+00> : vector<16x128xf32>
    %10 = tpu.matmul %8, %9, %cst_8 {dimension_numbers = #tpu.dot_dimension_numbers<[1], [0], [0], [1], [0, 0, 1, 1], [], []>} : vector<16x128xbf16>, vector<128x128xbf16>, vector<16x128xf32> -> vector<16x128xf32>
    %c0_9 = arith.constant 0 : index
    %c0_10 = arith.constant 0 : index
    %11 = vector.load %arg5[%c0_9, %c0_10] : memref<1x128xf32, #tpu.memory_space<vmem>>, vector<1x128xf32>
    %12 = vector.broadcast %11 : vector<1x128xf32> to vector<16x128xf32>
    %13 = arith.addf %10, %12 : vector<16x128xf32>
    %14 = tpu.iota {dimensions = array<i32: 1>} : vector<16x128xi32>
    %c4_i32 = arith.constant 4 : i32
    %15 = vector.broadcast %c4_i32 : i32 to vector<16x128xi32>
    %16 = arith.cmpi slt, %14, %15 : vector<16x128xi32>
    %c4_i32_11 = arith.constant 4 : i32
    %17 = vector.broadcast %c4_i32_11 : i32 to vector<16x128xi32>
    %18 = arith.cmpi eq, %14, %17 : vector<16x128xi32>
    %cst_12 = arith.constant 0xFF800000 : f32
    %19 = vector.broadcast %cst_12 : f32 to vector<16x128xf32>
    %20 = arith.select %16, %13, %19 : vector<16x128xi1>, vector<16x128xf32>
    %cst_13 = arith.constant dense<0xFF800000> : vector<16xf32>
    %21 = vector.multi_reduction <maximumf>, %20, %cst_13 [1] : vector<16x128xf32> to vector<16xf32>
    %22 = vector.shape_cast %21 : vector<16xf32> to vector<16x1xf32>
    %23 = vector.broadcast %22 : vector<16x1xf32> to vector<16x128xf32>
    %24 = arith.subf %20, %23 : vector<16x128xf32>
    %25 = math.exp %24 : vector<16x128xf32>
    %cst_14 = arith.constant dense<0.000000e+00> : vector<16xf32>
    %26 = vector.multi_reduction <add>, %25, %cst_14 [1] : vector<16x128xf32> to vector<16xf32>
    %27 = vector.shape_cast %26 : vector<16xf32> to vector<16x1xf32>
    %28 = tpu.reciprocal %27 {approx = true} : vector<16x1xf32> -> vector<16x1xf32>
    %29 = vector.broadcast %28 : vector<16x1xf32> to vector<16x128xf32>
    %30 = arith.mulf %25, %29 : vector<16x128xf32>
    %cst_15 = arith.constant 0.000000e+00 : f32
    %31 = vector.broadcast %cst_15 : f32 to vector<16x128xf32>
    %32 = arith.select %18, %13, %31 : vector<16x128xi1>, vector<16x128xf32>
    %33 = arith.select %16, %30, %32 : vector<16x128xi1>, vector<16x128xf32>
    %34 = arith.truncf %33 : vector<16x128xf32> to vector<16x128xbf16>
    %c0_16 = arith.constant 0 : index
    %c0_17 = arith.constant 0 : index
    %35 = vector.load %arg6[%c0_16, %c0_17] : memref<16x128xbf16, #tpu.memory_space<vmem>>, vector<16x128xbf16>
    tpu.vector_store %arg6[%c0_16, %c0_17], %34 {strides = array<i32>} : memref<16x128xbf16, #tpu.memory_space<vmem>>, vector<16x128xbf16>,
    return
  }
  func.func @transform_0(%arg0: i32) -> (i32, i32) {
    %c0_i32 = arith.constant 0 : i32
    %c0_i32_0 = arith.constant 0 : i32
    return %arg0, %c0_i32 : i32, i32
  }
  func.func @transform_1(%arg0: i32) -> (i32, i32) {
    %c0_i32 = arith.constant 0 : i32
    %c0_i32_0 = arith.constant 0 : i32
    %c0_i32_1 = arith.constant 0 : i32
    return %c0_i32, %c0_i32_0 : i32, i32
  }
  func.func @transform_2(%arg0: i32) -> (i32, i32) {
    %c0_i32 = arith.constant 0 : i32
    %c0_i32_0 = arith.constant 0 : i32
    %c0_i32_1 = arith.constant 0 : i32
    return %c0_i32, %c0_i32_0 : i32, i32
  }
  func.func @transform_3(%arg0: i32) -> (i32, i32) {
    %c0_i32 = arith.constant 0 : i32
    %c0_i32_0 = arith.constant 0 : i32
    %c0_i32_1 = arith.constant 0 : i32
    return %c0_i32, %c0_i32_0 : i32, i32
  }
  func.func @transform_4(%arg0: i32) -> (i32, i32) {
    %c0_i32 = arith.constant 0 : i32
    %c0_i32_0 = arith.constant 0 : i32
    %c0_i32_1 = arith.constant 0 : i32
    return %c0_i32, %c0_i32_0 : i32, i32
  }
  func.func @transform_5(%arg0: i32) -> (i32, i32) {
    %c0_i32 = arith.constant 0 : i32
    %c0_i32_0 = arith.constant 0 : i32
    return %arg0, %c0_i32 : i32, i32
  }
}

</mosaic_0001>

<bundles_post_ra>
// kernel: tpu_custom_call.1
= control target key start
LH: loop header
LB: loop body
LE: loop exit
PB: predicated region body
PF: predicated region fallthrough
CT: control target
= control target key end

     0   :  { %10 = vsyncpa [#allocation3], 0  ;;  %s481_s0 = inlined_call_operand.vmem [shape: bf16[16,8], index: 0, kind: input, shape index: {}]   ;;  %s482_s1 = inlined_call_operand.vmem [shape: bf16[8,128], index: 1, kind: input, shape index: {}]   ;;  %s483_s2 = inlined_call_operand.vmem [shape: f32[1,128], index: 2, kind: input, shape index: {}]   ;;  %s484_s3 = inlined_call_operand.hbm [shape: bf16[128,128], index: 3, kind: input, shape index: {}]   ;;  %s485_s4 = inlined_call_operand.vmem [shape: f32[1,128], index: 4, kind: input, shape index: {}]   ;;  %s486_s5 = inlined_call_operand.hbm [shape: bf16[16,128], index: 5, kind: output, shape index: {}]  }
   0x1   :  { %11 = vsyncpa [#allocation4], 0  ;;  %s399_s18 = smov [#allocation2]   ;;  %s351_s22 = scalar_lea.hbm %s484_s3, 1024 }
   0x2   :  { %s23_s19 = sshll.u32 %s399_s18, 4  ;;  %p352_p0 = scmp.ne.s32.totalorder %s484_s3, %s351_s22  ;;  %s24_s19 = int_to_ptr.vmem [resolvable:$true] %s23_s19 }
   0x3   :  { %p355_p1 = scmp.lt.u32.totalorder %s351_s22, %s484_s3 }
   0x5   :  { %p357_p2 = pnand %p355_p1, %p352_p0 }
   0x7   :  { %360 = shalt.err (!%p357_p2)
}
   0x8   :  { %s361_s27 = scalar_lea.vmem %s24_s19, 1024  ;;  %p366_p4 = scmp.lt.s32.totalorder %s24_s19, %s24_s19 }
   0x9   :  { %p362_p3 = scmp.ne.s32.totalorder %s24_s19, %s361_s27  ;;  %p367_p5 = scmp.lt.s32.totalorder %s361_s27, %s361_s27 }
   0xb   :  { %p368_p6 = por %p367_p5, %p366_p4 }
   0xd   :  { %p369_p7 = pnand %p368_p6, %p362_p3 }
   0xf   :  { %372 = shalt.err (!%p369_p7)
}
  0x10   :  { %s400_s28 = smov 64   ;;  %s401_s29 = smov 4  }
  0x11   :  { %29 = dma.hbm_to_vmem [thread:$0]  %s484_s3, 1024, %s24_s19, [#allocation3], %s400_s28, %s400_s28, %s401_s29  }
  0x12   :  { %395 = dma.done.wait [#allocation3], 1024  }
  0x13   :  { %396 = vsyncadd [#allocation3], 4294966272  ;;  %v402_v0 = vmov 0.0   ;;  %vm403_vm0 = vmmov 0   ;;  %vm55_vm1 = vcmask 1043456   ;;  %v334_v3 = vld [vmem:[%s481_s0] sm:$0xff]   ;;  %v215_v22 = vlaneseq }
  0x14   :  { %302 = vmatprep.subr.bf16.mxu0 %v402_v0  ;;  %304 = vmatprep.mubr.msk.bf16.mxu0 %vm403_vm0, %v402_v0  ;;  %v38_v1 = vld [vmem:[%s482_s1] sm:$0xf]  ;;  %vm51_vm2 = vcmask 64512   ;;  %v336_v5 = vld [vmem:[#allocation2 + $0x8] sm:$0xff]   ;;  %v337_v6 = vld [vmem:[#allocation2 + $0x10] sm:$0xff]  }
  0x15   :  { %308 = vmatprep.subr.bf16.mxu1 %v402_v0  ;;  %324 = vmatprep.mubr.msk.bf16.mxu1 %vm403_vm0, %v402_v0  ;;  %v57_v2 = vsel %vm55_vm1, %v38_v1, 0  ;;  %v335_v4 = vld [vmem:[#allocation2] sm:$0xff]   ;;  %v338_v7 = vld [vmem:[#allocation2 + $0x18] sm:$0xff]   ;;  %v340_v9 = vld [vmem:[#allocation2 + $0x28] sm:$0xff]   ;;  %v216_v23 = vand.u32 127, %v215_v22 }
  0x16   :  { %303 = vmatpush3.bf16.msra.mxu0 %v57_v2  ;;  %309 = vmatpush3.bf16.msra.mxu1 %v335_v4  ;;  %v339_v8 = vld [vmem:[#allocation2 + $0x20] sm:$0xff]   ;;  %v341_v10 = vld [vmem:[#allocation2 + $0x30] sm:$0xff]   ;;  %v342_v11 = vld [vmem:[#allocation2 + $0x38] sm:$0xff]  }
  0x17   :  { %310 = vmatprep.subr.bf16.mxu1 %v402_v0  ;;  %v270_v12 = vld [vmem:[%s483_s2] ss:$0 sm:$0xff]  ;;  %vm218_vm3 = vcmp.eq.s32.totalorder %v216_v23, 4  ;;  %vm217_vm4 = vcmp.lt.s32.totalorder %v216_v23, 4  ;;  %s404_s2 = smov [#allocation5]  }
  0x18   :  { %v273_v24 = vld [vmem:[%s485_s4] ss:$0 sm:$0xff]  ;;  %s258_s4 = sshll.u32 %s404_s2, 4  ;;  %s259_s4 = int_to_ptr.vmem [resolvable:$true] %s258_s4 }
  0x19   :  { %305 = vmatmul.mubr.msk.bf16.vlgmr.msra.gmra.mrb[0].mxu0 %vm51_vm2, %v334_v3  ;;  %s373_s12 = scalar_lea.vmem %s259_s4, 128  ;;  %p378_p9 = scmp.lt.s32.totalorder %s259_s4, %s259_s4 }
  0x1a   :  { %311 = vmatpush3.bf16.msra.mxu1 %v336_v5  ;;  %p374_p8 = scmp.ne.s32.totalorder %s259_s4, %s373_s12  ;;  %p379_p10 = scmp.lt.s32.totalorder %s373_s12, %s373_s12 }
  0x1b   :  { %312 = vmatprep.subr.bf16.mxu1 %v402_v0 }
  0x1c   :  { %p380_p11 = por %p379_p10, %p378_p9 }
  0x1e   :  { %313 = vmatpush3.bf16.msra.mxu1 %v337_v6  ;;  %p381_p12 = pnand %p380_p11, %p374_p8 }
  0x1f   :  { %314 = vmatprep.subr.bf16.mxu1 %v402_v0 }
  0x22   :  { %315 = vmatpush3.bf16.msra.mxu1 %v338_v7 }
  0x23   :  { %316 = vmatprep.subr.bf16.mxu1 %v402_v0 }
  0x26   :  { %317 = vmatpush3.bf16.msra.mxu1 %v339_v8 }
  0x27   :  { %318 = vmatprep.subr.bf16.mxu1 %v402_v0 }
  0x2a   :  { %319 = vmatpush3.bf16.msra.mxu1 %v340_v9 }
  0x2b   :  { %320 = vmatprep.subr.bf16.mxu1 %v402_v0 }
  0x2e   :  { %321 = vmatpush3.bf16.msra.mxu1 %v341_v10 }
  0x2f   :  { %322 = vmatprep.subr.bf16.mxu1 %v402_v0 }
  0x32   :  { %323 = vmatpush3.bf16.msra.mxu1 %v342_v11 }
  0xec   :  { %v93_v13 = vpop.f32.mrb[0].mxu0 }
  0xed   :  { %v94_v14 = vadd.f32 %v270_v12, %v93_v13  ;;  %v306_v15 = vpop.f32.mrb[1].mxu0 }
  0xee   :  { %v96_v16 = vpop.f32.mrb[2].mxu0 }
  0xef   :  { %v97_v17 = vadd.f32 %v270_v12, %v96_v16  ;;  %v307_v18 = vpop.f32.mrb[3].mxu0  ;;  %v100_v19 = vmax.f32 %v94_v14, 0.0 }
  0xf1   :  { %v101_v20 = vmax.f32 %v97_v17, 0.0 }
  0xf3   :  { %v102_v21 = vpack.c.bf16 %v101_v20, %v100_v19 }
  0xf5   :  { %325 = vmatmul.mubr.bf16.vlgmr.msra.gmra.mrb[0].mxu1 %v102_v21 }
 0x1c8   :  { %v208_v25 = vpop.f32.mrb[0].mxu1 }
 0x1c9   :  { %v209_v26 = vadd.f32 %v273_v24, %v208_v25  ;;  %v326_v27 = vpop.f32.mrb[1].mxu1 }
 0x1ca   :  { %v211_v28 = vpop.f32.mrb[2].mxu1 }
 0x1cb   :  { %v239_v29 = vsel %vm218_vm3, %v209_v26, 0.0  ;;  %v212_v30 = vadd.f32 %v273_v24, %v211_v28  ;;  %v327_v31 = vpop.f32.mrb[3].mxu1  ;;  %v219_v32 = vsel %vm217_vm4, %v209_v26, -inf }
 0x1cc   :  { %221 = vmax.xlane.f32.xlu0 %v219_v32 }
 0x1cd   :  { %v240_v33 = vsel %vm218_vm3, %v212_v30, 0.0  ;;  %v220_v34 = vsel %vm217_vm4, %v212_v30, -inf }
 0x1d0   :  { %223 = vmax.xlane.f32.xlu0 %v220_v34 }
 0x259   :  { %v222_v35 = vpop.xlane.xlu0 %221 }
 0x25a   :  { %v225_v36 = vsub.f32 %v219_v32, %v222_v35 }
 0x25c   :  { %v227_v37 = vmul.f32 1.442695, %v225_v36 }
 0x25d   :  { %v224_v38 = vpop.xlane.xlu0 %223 }
 0x25e   :  { %343 = vpow2.f32 %v227_v37  ;;  %v226_v39 = vsub.f32 %v220_v34, %v224_v38 }
 0x260   :  { %v229_v40 = vmul.f32 1.442695, %v226_v39 }
 0x262   :  { %345 = vpow2.f32 %v229_v40 }
 0x268   :  { %v344_v41 = vpop.eup %343 }
 0x269   :  { %231 = vadd.xlane.f32.xlu1 %v344_v41 }
 0x26c   :  { %v346_v42 = vpop.eup %345 }
 0x26d   :  { %233 = vadd.xlane.f32.xlu1 %v346_v42 }
 0x2f6   :  { %v232_v43 = vpop.xlane.xlu1 %231 }
 0x2f7   :  { %347 = vrcp.f32 %v232_v43 }
 0x2fa   :  { %v234_v44 = vpop.xlane.xlu1 %233 }
 0x2fb   :  { %349 = vrcp.f32 %v234_v44 }
 0x301   :  { %v348_v45 = vpop.eup %347 }
 0x302   :  { %v237_v46 = vmul.f32 %v348_v45, %v344_v41 }
 0x304   :  { %v241_v49 = vsel %vm217_vm4, %v237_v46, %v239_v29 }
 0x305   :  { %v350_v47 = vpop.eup %349 }
 0x306   :  { %v238_v48 = vmul.f32 %v350_v47, %v346_v42 }
 0x308   :  { %v242_v50 = vsel %vm217_vm4, %v238_v48, %v240_v33 }
 0x309   :  { %v289_v51 = vpack.c.bf16 %v242_v50, %v241_v49 }
 0x30b   :  { %290 = vst [vmem:[#allocation5] sm:$0xff] %v289_v51  }
 0x30c   :  { %384 = shalt.err (!%p381_p12)
}
 0x30d   :  { %s385_s15 = scalar_lea.hbm %s486_s5, 128 }
 0x30e   :  { %p386_p13 = scmp.ne.s32.totalorder %s486_s5, %s385_s15  ;;  %p389_p0 = scmp.lt.u32.totalorder %s385_s15, %s486_s5 }
 0x310   :  { %p391_p1 = pnand %p389_p0, %p386_p13 }
 0x312   :  { %394 = shalt.err (!%p391_p1)
}
 0x313   :  { %264 = dma.vmem_to_hbm [thread:$0]  %s259_s4, 128, %s486_s5, [#allocation4], %s400_s28, %s400_s28, %s401_s29  }
 0x314   :  { %397 = dma.done.wait [#allocation4], 128  }
 0x315   :  { %398 = vsyncadd [#allocation4], 4294967168 }
 0x316   :  { %268 = vsyncpa [#allocation3], 1 }
 0x317   :  { %269 = vsyncpa [#allocation4], 1 }

// kernel: tpu_custom_call.1
= control target key start
LH: loop header
LB: loop body
LE: loop exit
PB: predicated region body
PF: predicated region fallthrough
CT: control target
= control target key end

     0   :  { %10 = vsyncpa [#allocation3], 0  ;;  %s481_s0 = inlined_call_operand.vmem [shape: bf16[16,8], index: 0, kind: input, shape index: {}]   ;;  %s482_s1 = inlined_call_operand.vmem [shape: bf16[8,128], index: 1, kind: input, shape index: {}]   ;;  %s483_s2 = inlined_call_operand.vmem [shape: f32[1,128], index: 2, kind: input, shape index: {}]   ;;  %s484_s3 = inlined_call_operand.hbm [shape: bf16[128,128], index: 3, kind: input, shape index: {}]   ;;  %s485_s4 = inlined_call_operand.vmem [shape: f32[1,128], index: 4, kind: input, shape index: {}]   ;;  %s486_s5 = inlined_call_operand.hbm [shape: bf16[16,128], index: 5, kind: output, shape index: {}]  }
   0x1   :  { %11 = vsyncpa [#allocation4], 0  ;;  %s399_s18 = smov [#allocation2]   ;;  %s351_s22 = scalar_lea.hbm %s484_s3, 1024 }
   0x2   :  { %s23_s19 = sshll.u32 %s399_s18, 4  ;;  %p352_p0 = scmp.ne.s32.totalorder %s484_s3, %s351_s22  ;;  %s24_s19 = int_to_ptr.vmem [resolvable:$true] %s23_s19 }
   0x3   :  { %p355_p1 = scmp.lt.u32.totalorder %s351_s22, %s484_s3 }
   0x5   :  { %p357_p2 = pnand %p355_p1, %p352_p0 }
   0x7   :  { %360 = shalt.err (!%p357_p2)
}
   0x8   :  { %s361_s27 = scalar_lea.vmem %s24_s19, 1024  ;;  %p366_p4 = scmp.lt.s32.totalorder %s24_s19, %s24_s19 }
   0x9   :  { %p362_p3 = scmp.ne.s32.totalorder %s24_s19, %s361_s27  ;;  %p367_p5 = scmp.lt.s32.totalorder %s361_s27, %s361_s27 }
   0xb   :  { %p368_p6 = por %p367_p5, %p366_p4 }
   0xd   :  { %p369_p7 = pnand %p368_p6, %p362_p3 }
   0xf   :  { %372 = shalt.err (!%p369_p7)
}
  0x10   :  { %s400_s28 = smov 64   ;;  %s401_s29 = smov 4  }
  0x11   :  { %29 = dma.hbm_to_vmem [thread:$0]  %s484_s3, 1024, %s24_s19, [#allocation3], %s400_s28, %s400_s28, %s401_s29  }
  0x12   :  { %395 = dma.done.wait [#allocation3], 1024  }
  0x13   :  { %396 = vsyncadd [#allocation3], 4294966272  ;;  %v402_v0 = vmov 0.0   ;;  %vm403_vm0 = vmmov 0   ;;  %vm55_vm1 = vcmask 1043456   ;;  %v334_v3 = vld [vmem:[%s481_s0] sm:$0xff]   ;;  %v215_v22 = vlaneseq }
  0x14   :  { %302 = vmatprep.subr.bf16.mxu0 %v402_v0  ;;  %304 = vmatprep.mubr.msk.bf16.mxu0 %vm403_vm0, %v402_v0  ;;  %v38_v1 = vld [vmem:[%s482_s1] sm:$0xf]  ;;  %vm51_vm2 = vcmask 64512   ;;  %v336_v5 = vld [vmem:[#allocation2 + $0x8] sm:$0xff]   ;;  %v337_v6 = vld [vmem:[#allocation2 + $0x10] sm:$0xff]  }
  0x15   :  { %308 = vmatprep.subr.bf16.mxu1 %v402_v0  ;;  %324 = vmatprep.mubr.msk.bf16.mxu1 %vm403_vm0, %v402_v0  ;;  %v57_v2 = vsel %vm55_vm1, %v38_v1, 0  ;;  %v335_v4 = vld [vmem:[#allocation2] sm:$0xff]   ;;  %v338_v7 = vld [vmem:[#allocation2 + $0x18] sm:$0xff]   ;;  %v340_v9 = vld [vmem:[#allocation2 + $0x28] sm:$0xff]   ;;  %v216_v23 = vand.u32 127, %v215_v22 }
  0x16   :  { %303 = vmatpush3.bf16.msra.mxu0 %v57_v2  ;;  %309 = vmatpush3.bf16.msra.mxu1 %v335_v4  ;;  %v339_v8 = vld [vmem:[#allocation2 + $0x20] sm:$0xff]   ;;  %v341_v10 = vld [vmem:[#allocation2 + $0x30] sm:$0xff]   ;;  %v342_v11 = vld [vmem:[#allocation2 + $0x38] sm:$0xff]  }
  0x17   :  { %310 = vmatprep.subr.bf16.mxu1 %v402_v0  ;;  %v270_v12 = vld [vmem:[%s483_s2] ss:$0 sm:$0xff]  ;;  %vm218_vm3 = vcmp.eq.s32.totalorder %v216_v23, 4  ;;  %vm217_vm4 = vcmp.lt.s32.totalorder %v216_v23, 4  ;;  %s404_s2 = smov [#allocation5]  }
  0x18   :  { %v273_v24 = vld [vmem:[%s485_s4] ss:$0 sm:$0xff]  ;;  %s258_s4 = sshll.u32 %s404_s2, 4  ;;  %s259_s4 = int_to_ptr.vmem [resolvable:$true] %s258_s4 }
  0x19   :  { %305 = vmatmul.mubr.msk.bf16.vlgmr.msra.gmra.mrb[0].mxu0 %vm51_vm2, %v334_v3  ;;  %s373_s12 = scalar_lea.vmem %s259_s4, 128  ;;  %p378_p9 = scmp.lt.s32.totalorder %s259_s4, %s259_s4 }
  0x1a   :  { %311 = vmatpush3.bf16.msra.mxu1 %v336_v5  ;;  %p374_p8 = scmp.ne.s32.totalorder %s259_s4, %s373_s12  ;;  %p379_p10 = scmp.lt.s32.totalorder %s373_s12, %s373_s12 }
  0x1b   :  { %312 = vmatprep.subr.bf16.mxu1 %v402_v0 }
  0x1c   :  { %p380_p11 = por %p379_p10, %p378_p9 }
  0x1e   :  { %313 = vmatpush3.bf16.msra.mxu1 %v337_v6  ;;  %p381_p12 = pnand %p380_p11, %p374_p8 }
  0x1f   :  { %314 = vmatprep.subr.bf16.mxu1 %v402_v0 }
  0x22   :  { %315 = vmatpush3.bf16.msra.mxu1 %v338_v7 }
  0x23   :  { %316 = vmatprep.subr.bf16.mxu1 %v402_v0 }
  0x26   :  { %317 = vmatpush3.bf16.msra.mxu1 %v339_v8 }
  0x27   :  { %318 = vmatprep.subr.bf16.mxu1 %v402_v0 }
  0x2a   :  { %319 = vmatpush3.bf16.msra.mxu1 %v340_v9 }
  0x2b   :  { %320 = vmatprep.subr.bf16.mxu1 %v402_v0 }
  0x2e   :  { %321 = vmatpush3.bf16.msra.mxu1 %v341_v10 }
  0x2f   :  { %322 = vmatprep.subr.bf16.mxu1 %v402_v0 }
  0x32   :  { %323 = vmatpush3.bf16.msra.mxu1 %v342_v11 }
  0xec   :  { %v93_v13 = vpop.f32.mrb[0].mxu0 }
  0xed   :  { %v94_v14 = vadd.f32 %v270_v12, %v93_v13  ;;  %v306_v15 = vpop.f32.mrb[1].mxu0 }
  0xee   :  { %v96_v16 = vpop.f32.mrb[2].mxu0 }
  0xef   :  { %v97_v17 = vadd.f32 %v270_v12, %v96_v16  ;;  %v307_v18 = vpop.f32.mrb[3].mxu0  ;;  %v100_v19 = vmax.f32 %v94_v14, 0.0 }
  0xf1   :  { %v101_v20 = vmax.f32 %v97_v17, 0.0 }
  0xf3   :  { %v102_v21 = vpack.c.bf16 %v101_v20, %v100_v19 }
  0xf5   :  { %325 = vmatmul.mubr.bf16.vlgmr.msra.gmra.mrb[0].mxu1 %v102_v21 }
 0x1c8   :  { %v208_v25 = vpop.f32.mrb[0].mxu1 }
 0x1c9   :  { %v209_v26 = vadd.f32 %v273_v24, %v208_v25  ;;  %v326_v27 = vpop.f32.mrb[1].mxu1 }
 0x1ca   :  { %v211_v28 = vpop.f32.mrb[2].mxu1 }
 0x1cb   :  { %v239_v29 = vsel %vm218_vm3, %v209_v26, 0.0  ;;  %v212_v30 = vadd.f32 %v273_v24, %v211_v28  ;;  %v327_v31 = vpop.f32.mrb[3].mxu1  ;;  %v219_v32 = vsel %vm217_vm4, %v209_v26, -inf }
 0x1cc   :  { %221 = vmax.xlane.f32.xlu0 %v219_v32 }
 0x1cd   :  { %v240_v33 = vsel %vm218_vm3, %v212_v30, 0.0  ;;  %v220_v34 = vsel %vm217_vm4, %v212_v30, -inf }
 0x1d0   :  { %223 = vmax.xlane.f32.xlu0 %v220_v34 }
 0x259   :  { %v222_v35 = vpop.xlane.xlu0 %221 }
 0x25a   :  { %v225_v36 = vsub.f32 %v219_v32, %v222_v35 }
 0x25c   :  { %v227_v37 = vmul.f32 1.442695, %v225_v36 }
 0x25d   :  { %v224_v38 = vpop.xlane.xlu0 %223 }
 0x25e   :  { %343 = vpow2.f32 %v227_v37  ;;  %v226_v39 = vsub.f32 %v220_v34, %v224_v38 }
 0x260   :  { %v229_v40 = vmul.f32 1.442695, %v226_v39 }
 0x262   :  { %345 = vpow2.f32 %v229_v40 }
 0x268   :  { %v344_v41 = vpop.eup %343 }
 0x269   :  { %231 = vadd.xlane.f32.xlu1 %v344_v41 }
 0x26c   :  { %v346_v42 = vpop.eup %345 }
 0x26d   :  { %233 = vadd.xlane.f32.xlu1 %v346_v42 }
 0x2f6   :  { %v232_v43 = vpop.xlane.xlu1 %231 }
 0x2f7   :  { %347 = vrcp.f32 %v232_v43 }
 0x2fa   :  { %v234_v44 = vpop.xlane.xlu1 %233 }
 0x2fb   :  { %349 = vrcp.f32 %v234_v44 }
 0x301   :  { %v348_v45 = vpop.eup %347 }
 0x302   :  { %v237_v46 = vmul.f32 %v348_v45, %v344_v41 }
 0x304   :  { %v241_v49 = vsel %vm217_vm4, %v237_v46, %v239_v29 }
 0x305   :  { %v350_v47 = vpop.eup %349 }
 0x306   :  { %v238_v48 = vmul.f32 %v350_v47, %v346_v42 }
 0x308   :  { %v242_v50 = vsel %vm217_vm4, %v238_v48, %v240_v33 }
 0x309   :  { %v289_v51 = vpack.c.bf16 %v242_v50, %v241_v49 }
 0x30b   :  { %290 = vst [vmem:[#allocation5] sm:$0xff] %v289_v51  }
 0x30c   :  { %384 = shalt.err (!%p381_p12)
}
 0x30d   :  { %s385_s15 = scalar_lea.hbm %s486_s5, 128 }
 0x30e   :  { %p386_p13 = scmp.ne.s32.totalorder %s486_s5, %s385_s15  ;;  %p389_p0 = scmp.lt.u32.totalorder %s385_s15, %s486_s5 }
 0x310   :  { %p391_p1 = pnand %p389_p0, %p386_p13 }
 0x312   :  { %394 = shalt.err (!%p391_p1)
}
 0x313   :  { %264 = dma.vmem_to_hbm [thread:$0]  %s259_s4, 128, %s486_s5, [#allocation4], %s400_s28, %s400_s28, %s401_s29  }
 0x314   :  { %397 = dma.done.wait [#allocation4], 128  }
 0x315   :  { %398 = vsyncadd [#allocation4], 4294967168 }
 0x316   :  { %268 = vsyncpa [#allocation3], 1 }
 0x317   :  { %269 = vsyncpa [#allocation4], 1 }

</bundles_post_ra>
